<compile_context>
chip_gen: v7x
topology: tpu7x:2x2x1
jax: 0.10.0
libtpu: 0.0.40
codegen_flags: <defaults>
</compile_context>

<pallas_src>
import jax
import jax.numpy as jnp
from jax.experimental import pallas as pl
from jax.experimental.pallas import tpu as pltpu


def _routing_kernel(x_ref, w_ref, b_ref, o_ref):
    # x_ref: (1, C, T)   activation tile (C on sublanes, spatial on lanes)
    # w_ref: (E, C)      resident conv weight
    # b_ref: (E, 1)      resident bias
    # o_ref: (1, E, T)   lane-dense output tile
    acc = jnp.dot(w_ref[...], x_ref[0], preferred_element_type=jnp.float32)
    acc = acc + b_ref[...]                      # broadcast bias over lanes
    o_ref[0] = jax.nn.sigmoid(acc).astype(o_ref.dtype)


def routing_forward(x_nchw, weight, bias, *, max_tile=2048):
    """Pallas implementation of _routing.forward.

    Args:
      x_nchw: (B, C, H, W) float32
      weight: (E, C) float32  -- Conv2d(C, E, kernel_size=1).weight squeezed
      bias:   (E,)  float32
      max_tile: upper bound on the spatial lane tile (multiple of 128).
    Returns:
      (B*E*H*W,) float32 -- sigmoid of the flattened NCHW conv output.
    """
    B, C, H, W = x_nchw.shape
    E = weight.shape[0]
    HW = H * W

    # Spatial lane tile: multiple of 128, capped so double-buffered tiles stay
    # tiny relative to VMEM on every generation (incl. v7x's 64 MiB).
    hw_128 = ((HW + 127) // 128) * 128
    T = min(hw_128, max_tile)
    hw_pad = ((HW + T - 1) // T) * T
    n_t = hw_pad // T

    # NCHW-native view; only pad the spatial tail if needed (no transposes).
    x3d = x_nchw.reshape(B, C, HW)
    if hw_pad != HW:
        x3d = jnp.pad(x3d, ((0, 0), (0, 0), (0, hw_pad - HW)))
    b2d = bias.reshape(E, 1)

    out3d = pl.pallas_call(
        _routing_kernel,
        out_shape=jax.ShapeDtypeStruct((B, E, hw_pad), jnp.float32),
        grid_spec=pltpu.PrefetchScalarGridSpec(
            num_scalar_prefetch=0,
            grid=(B, n_t),
            in_specs=[
                # activation: one (C, T) spatial tile per step
                pl.BlockSpec((1, C, T), lambda b, t: (b, 0, t)),
                # weight: same block every step -> fetched once, stays resident
                pl.BlockSpec((E, C), lambda b, t: (0, 0)),
                # bias: same block every step -> fetched once, stays resident
                pl.BlockSpec((E, 1), lambda b, t: (0, 0)),
            ],
            out_specs=pl.BlockSpec((1, E, T), lambda b, t: (b, 0, t)),
        ),
        compiler_params=pltpu.CompilerParams(
            dimension_semantics=("parallel", "parallel")),
    )(x3d, weight, b2d)

    # Drop spatial padding; flatten is then exactly torch.flatten of the
    # (B, E, H, W) conv output (NCHW order), with zero extra HBM traffic.
    return out3d[:, :, :HW].reshape(-1)


def init_params(key, in_channels, num_experts):
    """Deterministic init matching Conv2d(in_channels, num_experts, 1) shapes."""
    kw, kb = jax.random.split(key)
    fan_in = in_channels  # 1x1 kernel
    bound = 1.0 / jnp.sqrt(fan_in)
    weight = jax.random.uniform(kw, (num_experts, in_channels),
                                minval=-bound, maxval=bound,
                                dtype=jnp.float32)
    bias = jax.random.uniform(kb, (num_experts,),
                              minval=-bound, maxval=bound,
                              dtype=jnp.float32)
    return weight, bias


if __name__ == "__main__":
    B, C, H, W = 2, 4, 16, 16
    num_experts = 8

    key = jax.random.PRNGKey(0)
    kx, kp = jax.random.split(key)
    x = jax.random.normal(kx, (B, C, H, W), dtype=jnp.float32)
    weight, bias = init_params(kp, C, num_experts)

    out = routing_forward(x, weight, bias)
    out = jax.block_until_ready(out)

    # reference (plain JAX) to sanity-check semantics
    ref = jax.nn.sigmoid(
        (jnp.einsum("bchw,ec->behw", x, weight)
         + bias[None, :, None, None]).reshape(-1))
    assert out.shape == (B * num_experts * H * W,)
    assert jnp.max(jnp.abs(out - ref)) < 1e-5

    print("KERNEL_OK")
</pallas_src>

<mosaic_0001>
module attributes {stable_mosaic.version = 11 : i64} {
  func.func @_routing_kernel(%arg0: i32, %arg1: i32, %arg2: memref<1x4x256xf32, #tpu.memory_space<vmem>>, %arg3: memref<8x4xf32, #tpu.memory_space<vmem>>, %arg4: memref<8x1xf32, #tpu.memory_space<vmem>>, %arg5: memref<1x8x256xf32, #tpu.memory_space<vmem>>) attributes {dimension_semantics = [#tpu.dimension_semantics<parallel>, #tpu.dimension_semantics<parallel>], iteration_bounds = array<i64: 2, 1>, scalar_prefetch = 0 : i64, scratch_operands = 0 : i64, tpu.core_type = #tpu.core_type<tc>, window_params = [{transform_indices = @transform_0, window_bounds = array<i64: 1, 4, 256>}, {pipeline_mode = #tpu.pipeline_mode<synchronous>, transform_indices = @transform_1, window_bounds = array<i64: 8, 4>}, {pipeline_mode = #tpu.pipeline_mode<synchronous>, transform_indices = @transform_2, window_bounds = array<i64: 8, 1>}, {transform_indices = @transform_3, window_bounds = array<i64: 1, 8, 256>}]} {
    %c0 = arith.constant 0 : index
    %c0_0 = arith.constant 0 : index
    %0 = vector.load %arg3[%c0, %c0_0] : memref<8x4xf32, #tpu.memory_space<vmem>>, vector<8x4xf32>
    %c0_1 = arith.constant 0 : index
    %c0_2 = arith.constant 0 : index
    %c0_3 = arith.constant 0 : index
    %1 = vector.load %arg2[%c0_1, %c0_2, %c0_3] : memref<1x4x256xf32, #tpu.memory_space<vmem>>, vector<1x4x256xf32>
    %2 = vector.shape_cast %1 : vector<1x4x256xf32> to vector<4x256xf32>
    %cst = arith.constant dense<0.000000e+00> : vector<8x256xf32>
    %3 = tpu.matmul %0, %2, %cst {dimension_numbers = #tpu.dot_dimension_numbers<[1], [0], [0], [1], [0, 0, 1, 1], [], []>} : vector<8x4xf32>, vector<4x256xf32>, vector<8x256xf32> -> vector<8x256xf32>
    %c0_4 = arith.constant 0 : index
    %c0_5 = arith.constant 0 : index
    %4 = vector.load %arg4[%c0_4, %c0_5] : memref<8x1xf32, #tpu.memory_space<vmem>>, vector<8x1xf32>
    %5 = vector.broadcast %4 : vector<8x1xf32> to vector<8x256xf32>
    %6 = arith.addf %3, %5 : vector<8x256xf32>
    %7 = arith.negf %6 : vector<8x256xf32>
    %8 = math.exp %7 : vector<8x256xf32>
    %cst_6 = arith.constant 1.000000e+00 : f32
    %9 = vector.broadcast %cst_6 : f32 to vector<8x256xf32>
    %10 = arith.addf %9, %8 : vector<8x256xf32>
    %11 = arith.divf %9, %10 : vector<8x256xf32>
    %c0_7 = arith.constant 0 : index
    %c0_8 = arith.constant 0 : index
    %c0_9 = arith.constant 0 : index
    %12 = vector.load %arg5[%c0_7, %c0_8, %c0_9] : memref<1x8x256xf32, #tpu.memory_space<vmem>>, vector<1x8x256xf32>
    %13 = vector.shape_cast %12 : vector<1x8x256xf32> to vector<8x256xf32>
    %14 = vector.shape_cast %11 : vector<8x256xf32> to vector<1x8x256xf32>
    tpu.vector_store %arg5[%c0_7, %c0_8, %c0_9], %14 {strides = array<i32>} : memref<1x8x256xf32, #tpu.memory_space<vmem>>, vector<1x8x256xf32>,
    return
  }
  func.func @transform_0(%arg0: i32, %arg1: i32) -> (i32, i32, i32) {
    %c0_i32 = arith.constant 0 : i32
    %c0_i32_0 = arith.constant 0 : i32
    return %arg0, %c0_i32, %arg1 : i32, i32, i32
  }
  func.func @transform_1(%arg0: i32, %arg1: i32) -> (i32, i32) {
    %c0_i32 = arith.constant 0 : i32
    %c0_i32_0 = arith.constant 0 : i32
    %c0_i32_1 = arith.constant 0 : i32
    return %c0_i32, %c0_i32_0 : i32, i32
  }
  func.func @transform_2(%arg0: i32, %arg1: i32) -> (i32, i32) {
    %c0_i32 = arith.constant 0 : i32
    %c0_i32_0 = arith.constant 0 : i32
    %c0_i32_1 = arith.constant 0 : i32
    return %c0_i32, %c0_i32_0 : i32, i32
  }
  func.func @transform_3(%arg0: i32, %arg1: i32) -> (i32, i32, i32) {
    %c0_i32 = arith.constant 0 : i32
    %c0_i32_0 = arith.constant 0 : i32
    return %arg0, %c0_i32, %arg1 : i32, i32, i32
  }
}

</mosaic_0001>

<bundles_post_ra>
// kernel: tpu_custom_call.1
= control target key start
LH: loop header
LB: loop body
LE: loop exit
PB: predicated region body
PF: predicated region fallthrough
CT: control target
= control target key end

     0   :  { %8 = vsyncpa [#allocation3], 0  ;;  %s705_s0 = inlined_call_operand.vmem [shape: f32[2,4,256], index: 0, kind: input, shape index: {}]   ;;  %s706_s1 = inlined_call_operand.vmem [shape: f32[8,4], index: 1, kind: input, shape index: {}]   ;;  %s707_s2 = inlined_call_operand.vmem [shape: f32[8,1], index: 2, kind: input, shape index: {}]   ;;  %s708_s3 = inlined_call_operand.hbm [shape: f32[2,8,256], index: 3, kind: output, shape index: {}]  }
   0x1   :  { %10 = vsyncpa [#allocation3 + $0x1], 0  ;;  %s587_s12 = smov 0   ;;  %s589_s13 = smov 0  }
   0x2   :  { %s591_s14 = smov 0   ;;  %s593_s15 = smov 0  }
   0x3   :  { %s595_s16 = smov 0   ;;  %s597_s17 = smov 0  }
   0x4 LB: > { %s397_s18 = sadd.s32 4294967295, %s562_s17   ;;  %s398_s19 = sadd.s32 4294967294, %s562_s17   ;;  %s562_s17 = sphi %s597_s17, %s16_s17   ;;  %s558_s16 = sphi %s595_s16, %s715_s16   ;;  %s554_s15 = sphi %s593_s15, %s714_s15   ;;  %s550_s14 = sphi %s591_s14, %s713_s14   ;;  %s546_s13 = sphi %s589_s13, %s712_s13   ;;  %s542_s12 = sphi %s587_s12, %s711_s12  }
   0x5   : > { %s28_s20 = sadd.s32 1, %s558_s16  ;;  %s107_s21 = sadd.s32 1, %s550_s14 }
   0x6   : > { %p30_p0 = scmp.ge.s32.totalorder %s28_s20, 2  ;;  %p117_p1 = scmp.ne.s32.totalorder %s550_s14, %s546_s13 }
   0x7   : > { %p118_p2 = scmp.eq.s32.totalorder %s397_s18, 1  ;;  %p123_p3 = scmp.ne.s32.totalorder %s546_s13, %s542_s12 }
   0x8   : > { %s717_s20 = smov (%p30_p0, %s28_s20), 0  ;;  %p124_p5 = scmp.eq.s32.totalorder %s398_s19, 1 }
   0x9   : > { %p627_p4 = por %p118_p2, %p117_p1  ;;  %s102_s23 = ssub.s32 %s558_s16, %s717_s20 }
   0xa   : > { %p401_p6 = scmp.ge.s32.totalorder %s562_s17, 1  ;;  %p105_p7 = scmp.eq.s32.totalorder %s102_s23, 0 }
   0xb   : > { %p634_p8 = por %p124_p5, %p123_p3  ;;  %p161_p9 = scmp.lt.s32.totalorder %s562_s17, 3 }
   0xc   : > { %s640_s25 = scalar_select %p105_p7, %s550_s14, %s107_s21  }
   0xd   : > { %p162_p10 = pnand %p401_p6, %p161_p9 }
   0xe   : > { %p190_p11 = scmp.lt.s32.totalorder (!%p162_p10), %s554_s15, 1  ;;  %v564_v0 = vmov (!%p162_p10), 0.0   ;;  %v565_v1 = vmov (!%p162_p10), 0   ;;  %v202_v2 = vld [vmem:[%s707_s2] sm:$0xff] (!%p162_p10)  ;;  %vm214_vm0 = vcmask (!%p162_p10), 1043456   ;;  %vm210_vm1 = vcmask (!%p162_p10), 31744  }
   0xf   : > { %165 = sbr.rel (%p162_p10) target bundleno = 286 (0x11e), region = 32  ;;  %283 = vmatprep.mubr.f32.mxu0 (!%p162_p10), %v564_v0  ;;  %474 = vset.pattern.permute.xlu0 (!%p162_p10), %v565_v1  ;;  %v200_v5 = vld [vmem:[%s706_s1] sm:$0xff] (!%p162_p10)  ;;  %s186_s8 = sand.u32 (!%p162_p10), 1, %s546_s13  }
  0x10   : > { %205 = vperm.xlu0 (!%p162_p10), %474, %v202_v2   ;;  %s402_s9 = sshll.u32 (!%p162_p10), %s186_s8, 4  ;;  %s416_s10 = sshll.u32 (!%p162_p10), %s554_s15, 8 }
  0x11   : > { %s188_s11 = scalar_lea.vmem (!%p162_p10), [#allocation2], %s402_s9  ;;  %s658_s23 = scalar_lea.hbm (!%p162_p10), %s708_s3, %s416_s10 }
  0x12   : > { %s321_s18 = sshll.u32 (!%p162_p10), %s188_s11, 4  ;;  %s305_s26 = scalar_lea.sflag (!%p162_p10), [#allocation3], %s186_s8  ;;  %s660_s18 = int_to_ptr.vmem [resolvable:$true] %s321_s18 }
  0x13   : > { %s484_s27 = scalar_lea.vmem (!%p162_p10), %s660_s18, 256 }
  0x14   : > { %p485_p12 = scmp.ne.s32.totalorder (!%p162_p10), %s660_s18, %s484_s27 }
  0x16   : > { %s191_s28 = scalar_select %p190_p11, %s554_s15, 1 }
  0x17   : > { %p486_p13 = pnand %p485_p12, %p627_p4  ;;  %s566_s15 = smov [#allocation2]  }
  0x18   : > { %s415_s29 = sshll.u32 %s191_s28, 3  ;;  %s488_s28 = sshll.u32 %s566_s15, 4  ;;  %s489_s28 = int_to_ptr.vmem [resolvable:$false] %s488_s28 }
  0x19   : > { %s197_s5 = scalar_lea.vmem %s705_s0, %s415_s29  ;;  %p487_p0 = pneg %p486_p13 }
  0x1a   : > { %v201_v3 = vld [vmem:[%s197_s5] sm:$0xff]  ;;  %s490_s29 = scalar_lea.vmem %s489_s28, 512  ;;  %p491_p1 = scmp.lt.s32.totalorder %s660_s18, %s489_s28 }
  0x1b   : > { %v209_v4 = vcombine.high %v201_v3, %v201_v3  ;;  %p492_p2 = scmp.lt.s32.totalorder %s490_s29, %s484_s27 }
  0x1d   : > { %405 = vmatprep.subr.msk.mxu0 %vm214_vm0, %v209_v4  ;;  %p493_p3 = por %p492_p2, %p491_p1 }
  0x1e   : > { %406 = vmatpush1.msk.msra.mxu0 %vm214_vm0, %v201_v3 }
  0x1f   : > { %407 = vmatmul.mubr.msk.f32.vlgmr.msra.gmra.mrb[0].mxu0 %vm210_vm1, %v200_v5  ;;  %p494_p5 = pnand %p493_p3, %p487_p0 }
  0x8f   : > { %v206_v6 = vpop.permute.xlu0 %205 }
  0xf2   : > { %v285_v7 = vpop.f32.mrb[0].mxu0 }
  0xf3   : > { %v286_v8 = vadd.f32 %v285_v7, %v206_v6  ;;  %v287_v9 = vpop.f32.mrb[1].mxu0 }
  0xf4   : > { %v288_v10 = vadd.f32 %v287_v9, %v206_v6 }
  0xf5   : > { %v408_v11 = vmul.f32 -1.442695, %v286_v8 }
  0xf6   : > { %v409_v12 = vmul.f32 -1.442695, %v288_v10 }
  0xf7   : > { %476 = vpow2.f32 %v408_v11 }
  0xf8   : > { %478 = vpow2.f32 %v409_v12 }
 0x101   : > { %v477_v13 = vpop.eup %476 }
 0x102   : > { %v479_v14 = vpop.eup %478  ;;  %v296_v15 = vadd.f32 1.0, %v477_v13 }
 0x103   : > { %v297_v16 = vadd.f32 1.0, %v479_v14 }
 0x104   : > { %480 = vrcp.f32 %v296_v15 }
 0x105   : > { %482 = vrcp.f32 %v297_v16 }
 0x10e   : > { %v481_v17 = vpop.eup %480 }
 0x10f   : > { %v483_v18 = vpop.eup %482  ;;  %302 = vst [vmem:[%s188_s11] sm:$0xff] %v481_v17 }
 0x110   : > { %303 = vst [vmem:[%s188_s11 + $0x8] sm:$0xff] %v483_v18 }
 0x111   : > { %497 = shalt.err (!%p494_p5)
}
 0x112   : > { %s498_s30 = scalar_lea.hbm %s658_s23, 256  ;;  %s502_s6 = scalar_lea.hbm %s708_s3, 512 }
 0x113   : > { %p499_p6 = scmp.ne.s32.totalorder %s658_s23, %s498_s30  ;;  %p503_p10 = scmp.lt.u32.totalorder %s658_s23, %s708_s3 }
 0x114   : > { %p504_p11 = scmp.lt.u32.totalorder %s502_s6, %s498_s30  ;;  %p506_p13 = scmp.lt.u32.totalorder %s498_s30, %s658_s23 }
 0x115   : > { %p500_p7 = pnand %p499_p6, %p627_p4 }
 0x116   : > { %p505_p12 = por %p504_p11, %p503_p10 }
 0x117   : > { %p501_p9 = pneg %p500_p7 }
 0x118   : > { %p507_p0 = por %p506_p13, %p505_p12 }
 0x11a   : > { %p508_p1 = pnand %p507_p0, %p501_p9 }
 0x11c   : > { %511 = shalt.err (!%p508_p1)
}
 0x11d   : > { %417 = dma.vmem_to_hbm [thread:$0]  (%p627_p4), %s660_s18, 256, %s658_s23, %s305_s26  }
 0x11e PF: > { %p423_p2 = scmp.ge.s32.totalorder %s562_s17, 2  ;;  %s333_s9 = sand.u32 1, %s542_s12  }
 0x11f   : > { %s334_s10 = scalar_lea.sflag [#allocation3], %s333_s9 }
 0x120   : > { %p420_p3 = pnand %p423_p2, %p634_p8 }
 0x122   : > { %537 = dma.done.wait (!%p420_p3), %s334_s10, 256  }
 0x123   : > { %539 = vsyncadd (!%p420_p3), %s334_s10, 4294967040  ;;  %s16_s17 = sadd.s32 1, %s562_s17   ;;  %s711_s12 = smov %s546_s13 }
 0x124   : > { %p13_p5 = scmp.ge.s32.totalorder %s16_s17, 4   ;;  %s712_s13 = smov %s550_s14 }
 0x125   : > { %s713_s14 = smov %s640_s25  ;;  %s714_s15 = smov %s558_s16 }
 0x126   : > { %s715_s16 = smov %s717_s20  ;;  %15 = sbr.rel (!%p13_p5) target bundleno = 4 (0x4), region = 67 }
 0x12d   :  { %339 = vsyncpa [#allocation3], 1 }
 0x12e   :  { %341 = vsyncpa [#allocation3 + $0x1], 1 }

</bundles_post_ra>
